<compile_context>
chip_gen: v7x
topology: tpu7x:2x2x1
jax: 0.10.0
libtpu: 0.0.40
codegen_flags: <defaults>
</compile_context>

<pallas_src>
import jax
import jax.numpy as jnp
from jax.experimental import pallas as pl
from jax.experimental.pallas import tpu as pltpu

_LANES = 128
_SUBLANES = 8


def _affine_constant_kernel(x_ref, s_ref, t_ref, z_ref):
    # (TB, Dl) tile; s/t are (1, Dl) rows broadcast over the batch tile.
    x = x_ref[...].astype(jnp.float32)
    z = x * jnp.exp(s_ref[...]) + t_ref[...]          # exp on EUP, mul+add on VPU
    z_ref[...] = z.astype(z_ref.dtype)


def affine_constant_forward(x, s=None, t=None, *, block_batch=None,
                            vmem_limit_bytes=32 * 1024 * 1024):
    """Pallas port of AffineConstantTransform.forward.

    x: (B, D); s, t: (1, D) learned constants (None -> no scale / no shift).
    Returns (z, -log_det); z has x's dtype and shape, -log_det is (1,) when s is
    given (torch: sum over dim=1 of a (1, D) param) or (B,) when s is None
    (torch builds zeros of x's shape in that case).
    """
    B, D = x.shape
    out_dtype = x.dtype

    # ---- -log_det lives in the wrapper (batch-independent (1, D) reduce). ----
    if s is None:
        s_arr = jnp.zeros((1, D), jnp.float32)
        neg_log_det = jnp.zeros((B,), jnp.float32)    # torch scale=False -> (B,)
    else:
        s_arr = s.astype(jnp.float32)
        neg_log_det = -jnp.sum(s_arr, axis=1)         # (1,)
    t_arr = jnp.zeros((1, D), jnp.float32) if t is None else t.astype(jnp.float32)

    # ---- Lane-dense repack for small D so stores are full-lane vst. ----
    if D < _LANES and _LANES % D == 0 and (B * D) % _LANES == 0:
        reps = _LANES // D
        x2 = x.reshape(B * D // _LANES, _LANES)
        s_row = jnp.tile(s_arr, (1, reps))
        t_row = jnp.tile(t_arr, (1, reps))
        Dl = _LANES
    else:
        x2, s_row, t_row, Dl = x, s_arr, t_arr, D
    rows = x2.shape[0]

    # ---- Tile sizing: ~2 MiB input tile, sublane-aligned, >= 2 grid steps. ----
    itemsize = jnp.dtype(out_dtype).itemsize
    if block_batch is None:
        tile_target_bytes = 2 * 1024 * 1024
        tb = max(_SUBLANES, tile_target_bytes // max(1, Dl * itemsize))
        tb = min(tb, rows)
        if rows >= _SUBLANES:
            tb = max(_SUBLANES, (tb // _SUBLANES) * _SUBLANES)
        if tb >= rows and rows >= 2 * _SUBLANES:
            # Split so v7x megacore gets >= 2 "parallel" steps to shard.
            tb = max(_SUBLANES, ((rows // 2) // _SUBLANES) * _SUBLANES)
        block_batch = tb
    else:
        block_batch = min(block_batch, rows)
        if rows >= _SUBLANES:
            block_batch = max(_SUBLANES, (block_batch // _SUBLANES) * _SUBLANES)
    block_batch = max(1, block_batch)

    # ---- Pad rows to a multiple of the tile (never a whole-array fallback). ----
    rows_p = ((rows + block_batch - 1) // block_batch) * block_batch
    if rows_p != rows:
        x2 = jnp.pad(x2, ((0, rows_p - rows), (0, 0)))
    grid = (rows_p // block_batch,)

    cost = pl.CostEstimate(
        flops=2 * rows_p * Dl,                        # mul + add per element
        transcendentals=grid[0] * Dl,                 # exp(s) once per grid step
        bytes_accessed=2 * rows_p * Dl * itemsize + 2 * Dl * 4,
    )

    z2 = pl.pallas_call(
        _affine_constant_kernel,
        out_shape=jax.ShapeDtypeStruct((rows_p, Dl), out_dtype),
        grid=grid,
        in_specs=[
            pl.BlockSpec((block_batch, Dl), lambda b: (b, 0)),  # x tile
            pl.BlockSpec((1, Dl), lambda b: (0, 0)),            # s row (whole)
            pl.BlockSpec((1, Dl), lambda b: (0, 0)),            # t row (whole)
        ],
        out_specs=pl.BlockSpec((block_batch, Dl), lambda b: (b, 0)),
        compiler_params=pltpu.CompilerParams(
            dimension_semantics=("parallel",),
            vmem_limit_bytes=vmem_limit_bytes),
        cost_estimate=cost,
    )(x2, s_row, t_row)

    z2 = z2[:rows]
    z = z2.reshape(B, D) if z2.shape != (B, D) else z2
    return z, neg_log_det


def reference_forward(x, s, t):
    """Pure-JAX mirror of the PyTorch forward (computed in f32)."""
    xf = x.astype(jnp.float32)
    z = xf * jnp.exp(s.astype(jnp.float32)) + t.astype(jnp.float32)
    return z.astype(x.dtype), -jnp.sum(s.astype(jnp.float32), axis=1)


# TODO(synk): backward() (inverse pass x = (z - t) * exp(-s)) is not ported;
# only forward() is implemented per the task spec.

if __name__ == "__main__":
    key = jax.random.PRNGKey(0)
    kx, ks, kt = jax.random.split(key, 3)

    # ---- Main case: f32, D = 128 lanes, 2+ grid steps. ----
    B, D = 256, 128
    x = jax.random.normal(kx, (B, D), dtype=jnp.float32)
    s = jax.random.normal(ks, (1, D), dtype=jnp.float32)
    t = jax.random.normal(kt, (1, D), dtype=jnp.float32)

    z, neg_log_det = affine_constant_forward(x, s, t)
    jax.block_until_ready((z, neg_log_det))
    z_ref, nld_ref = reference_forward(x, s, t)
    assert z.shape == (B, D) and z.dtype == x.dtype
    assert neg_log_det.shape == (1,)
    assert jnp.allclose(z, z_ref, rtol=1e-5, atol=1e-5)
    assert jnp.allclose(neg_log_det, nld_ref, rtol=1e-5, atol=1e-5)

    # ---- Native bf16 I/O (no wrapper-level f32 round trip). ----
    x_bf = x.astype(jnp.bfloat16)
    z_bf, nld_bf = affine_constant_forward(x_bf, s, t)
    jax.block_until_ready((z_bf, nld_bf))
    z_bf_ref, _ = reference_forward(x_bf, s, t)
    assert z_bf.dtype == jnp.bfloat16
    assert jnp.allclose(z_bf.astype(jnp.float32), z_bf_ref.astype(jnp.float32),
                        rtol=2e-2, atol=2e-2)

    # ---- Small-D lane-dense path + non-divisible batch. ----
    Bs, Ds = 100, 32
    xs = jax.random.normal(kx, (Bs, Ds), dtype=jnp.float32)
    ss = jax.random.normal(ks, (1, Ds), dtype=jnp.float32)
    ts = jax.random.normal(kt, (1, Ds), dtype=jnp.float32)
    zs, nlds = affine_constant_forward(xs, ss, ts)
    jax.block_until_ready((zs, nlds))
    zs_ref, nlds_ref = reference_forward(xs, ss, ts)
    assert zs.shape == (Bs, Ds)
    assert jnp.allclose(zs, zs_ref, rtol=1e-5, atol=1e-5)
    assert jnp.allclose(nlds, nlds_ref, rtol=1e-5, atol=1e-5)

    # ---- scale=False / shift=False path: -log_det follows torch's (B,) shape. ----
    z0, nld0 = affine_constant_forward(xs, None, None)
    jax.block_until_ready((z0, nld0))
    assert nld0.shape == (Bs,) and jnp.allclose(nld0, 0.0)
    assert jnp.allclose(z0, xs, rtol=1e-6, atol=1e-6)

    print("KERNEL_OK")
</pallas_src>

<mosaic_0001>
module attributes {stable_mosaic.version = 11 : i64} {
  func.func @_affine_constant_kernel(%arg0: i32, %arg1: memref<128x128xf32, #tpu.memory_space<vmem>>, %arg2: memref<1x128xf32, #tpu.memory_space<vmem>>, %arg3: memref<1x128xf32, #tpu.memory_space<vmem>>, %arg4: memref<128x128xf32, #tpu.memory_space<vmem>>) attributes {dimension_semantics = [#tpu.dimension_semantics<parallel>], iteration_bounds = array<i64: 2>, scalar_prefetch = 0 : i64, scratch_operands = 0 : i64, tpu.core_type = #tpu.core_type<tc>, window_params = [{transform_indices = @transform_0, window_bounds = array<i64: 128, 128>}, {pipeline_mode = #tpu.pipeline_mode<synchronous>, transform_indices = @transform_1, window_bounds = array<i64: 1, 128>}, {pipeline_mode = #tpu.pipeline_mode<synchronous>, transform_indices = @transform_2, window_bounds = array<i64: 1, 128>}, {transform_indices = @transform_3, window_bounds = array<i64: 128, 128>}]} {
    %c0 = arith.constant 0 : index
    %c0_0 = arith.constant 0 : index
    %0 = vector.load %arg1[%c0, %c0_0] : memref<128x128xf32, #tpu.memory_space<vmem>>, vector<128x128xf32>
    %c0_1 = arith.constant 0 : index
    %c0_2 = arith.constant 0 : index
    %1 = vector.load %arg2[%c0_1, %c0_2] : memref<1x128xf32, #tpu.memory_space<vmem>>, vector<1x128xf32>
    %2 = math.exp %1 : vector<1x128xf32>
    %3 = vector.broadcast %2 : vector<1x128xf32> to vector<128x128xf32>
    %4 = arith.mulf %0, %3 : vector<128x128xf32>
    %c0_3 = arith.constant 0 : index
    %c0_4 = arith.constant 0 : index
    %5 = vector.load %arg3[%c0_3, %c0_4] : memref<1x128xf32, #tpu.memory_space<vmem>>, vector<1x128xf32>
    %6 = vector.broadcast %5 : vector<1x128xf32> to vector<128x128xf32>
    %7 = arith.addf %4, %6 : vector<128x128xf32>
    %c0_5 = arith.constant 0 : index
    %c0_6 = arith.constant 0 : index
    %8 = vector.load %arg4[%c0_5, %c0_6] : memref<128x128xf32, #tpu.memory_space<vmem>>, vector<128x128xf32>
    tpu.vector_store %arg4[%c0_5, %c0_6], %7 {strides = array<i32>} : memref<128x128xf32, #tpu.memory_space<vmem>>, vector<128x128xf32>,
    return
  }
  func.func @transform_0(%arg0: i32) -> (i32, i32) {
    %c0_i32 = arith.constant 0 : i32
    %c0_i32_0 = arith.constant 0 : i32
    return %arg0, %c0_i32 : i32, i32
  }
  func.func @transform_1(%arg0: i32) -> (i32, i32) {
    %c0_i32 = arith.constant 0 : i32
    %c0_i32_0 = arith.constant 0 : i32
    %c0_i32_1 = arith.constant 0 : i32
    return %c0_i32, %c0_i32_0 : i32, i32
  }
  func.func @transform_2(%arg0: i32) -> (i32, i32) {
    %c0_i32 = arith.constant 0 : i32
    %c0_i32_0 = arith.constant 0 : i32
    %c0_i32_1 = arith.constant 0 : i32
    return %c0_i32, %c0_i32_0 : i32, i32
  }
  func.func @transform_3(%arg0: i32) -> (i32, i32) {
    %c0_i32 = arith.constant 0 : i32
    %c0_i32_0 = arith.constant 0 : i32
    return %arg0, %c0_i32 : i32, i32
  }
}

</mosaic_0001>

<bundles_post_ra>
// kernel: tpu_custom_call.1
= control target key start
LH: loop header
LB: loop body
LE: loop exit
PB: predicated region body
PF: predicated region fallthrough
CT: control target
= control target key end

     0   :  { %8 = vsyncpa [#allocation3], 0  ;;  %s760_s0 = inlined_call_operand.hbm [shape: f32[256,128], index: 0, kind: input, shape index: {}]   ;;  %s761_s1 = inlined_call_operand.vmem [shape: f32[1,128], index: 1, kind: input, shape index: {}]   ;;  %s762_s2 = inlined_call_operand.vmem [shape: f32[1,128], index: 2, kind: input, shape index: {}]   ;;  %s763_s3 = inlined_call_operand.hbm [shape: f32[256,128], index: 3, kind: output, shape index: {}]  }
   0x1   :  { %10 = vsyncpa [#allocation3 + $0x1], 0 }
   0x2   :  { %11 = vsyncpa [#allocation4], 0 }
   0x3   :  { %13 = vsyncpa [#allocation4 + $0x1], 0  ;;  %s551_s12 = smov 0   ;;  %s553_s13 = smov 0  }
   0x4   :  { %s555_s14 = smov 0   ;;  %s557_s15 = smov 0  }
   0x5 LB: > { %s572_s16 = sadd.s32 4294967295, %s523_s15   ;;  %s358_s17 = sadd.s32 4294967294, %s523_s15   ;;  %s523_s15 = sphi %s557_s15, %s776_s15   ;;  %s519_s14 = sphi %s555_s14, %s775_s14   ;;  %s515_s13 = sphi %s553_s13, %s774_s13   ;;  %s511_s12 = sphi %s551_s12, %s773_s12  }
   0x6   : > { %s576_s18 = sadd.s32 1, %s523_s15   ;;  %s26_s19 = sadd.s32 1, %s519_s14 }
   0x7   : > { %s23_s20 = ssub.s32 %s523_s15, %s576_s18  ;;  %p33_p0 = scmp.ne.s32.totalorder %s519_s14, %s515_s13 }
   0x8   : > { %p24_p1 = scmp.eq.s32.totalorder %s23_s20, 0  ;;  %p34_p2 = scmp.eq.s32.totalorder %s523_s15, 0 }
   0x9   : > { %p39_p3 = scmp.ne.s32.totalorder %s515_s13, %s511_s12  ;;  %p40_p4 = scmp.eq.s32.totalorder %s572_s16, 0 }
   0xa   : > { %s588_s21 = scalar_select %p24_p1, %s519_s14, %s26_s19  }
   0xb   : > { %p590_p5 = por %p34_p2, %p33_p0  ;;  %p594_p6 = por %p40_p4, %p39_p3 }
   0xc   : > { %p105_p7 = scmp.eq.s32.totalorder %s572_s16, 1  ;;  %p111_p8 = scmp.eq.s32.totalorder %s358_s17, 1 }
   0xd   : > { %p387_p10 = scmp.lt.s32.totalorder %s523_s15, 2  ;;  %s137_s26 = sand.u32 1, %s519_s14  }
   0xe   : > { %p601_p11 = por %p105_p7, %p33_p0  ;;  %p605_p12 = por %p111_p8, %p39_p3 }
   0xf   : > { %s373_s27 = sshll.u32 %s523_s15, 11  ;;  %s361_s28 = sshll.u32 %s137_s26, 7 }
  0x10   : > { %s767_s24 = scalar_select %p601_p11, 1, 0 }
  0x11   : > { %s768_s25 = scalar_select %p605_p12, 1, 0 }
  0x12   : > { %s614_s4 = scalar_lea.hbm %s760_s0, %s373_s27  ;;  %s141_s5 = scalar_lea.vmem [#allocation2], %s361_s28 }
  0x13   : > { %s148_s6 = sshll.u32 %s141_s5, 4  ;;  %p618_p13 = pnand %p387_p10, %p590_p5  ;;  %s622_s6 = int_to_ptr.vmem [resolvable:$true] %s148_s6 }
  0x14   : > { %s624_s8 = scalar_lea.sflag [#allocation3], %s137_s26  ;;  %s427_s9 = scalar_lea.hbm %s614_s4, 2048 }
  0x15   : > { %p428_p0 = scmp.ne.s32.totalorder %s614_s4, %s427_s9  ;;  %p429_p1 = pneg %p618_p13 }
  0x16   : > { %s432_s17 = scalar_lea.hbm %s760_s0, 4096  ;;  %p433_p4 = scmp.lt.u32.totalorder %s614_s4, %s760_s0 }
  0x17   : > { %p430_p2 = pnand %p429_p1, %p428_p0  ;;  %p434_p5 = scmp.lt.u32.totalorder %s432_s17, %s427_s9 }
  0x18   : > { %p436_p8 = scmp.lt.u32.totalorder %s427_s9, %s614_s4 }
  0x19   : > { %p431_p3 = pneg %p430_p2  ;;  %p435_p7 = por %p434_p5, %p433_p4 }
  0x1b   : > { %p437_p10 = por %p436_p8, %p435_p7 }
  0x1d   : > { %p438_p9 = pnand %p437_p10, %p431_p3 }
  0x1f   : > { %441 = shalt.err (!%p438_p9)
}
  0x20   : > { %s442_s22 = scalar_lea.vmem %s622_s6, 2048  ;;  %s525_s26 = smov [#allocation2]  }
  0x21   : > { %p443_p0 = scmp.ne.s32.totalorder %s622_s6, %s442_s22  ;;  %s447_s27 = sshll.u32 %s525_s26, 4  ;;  %s448_s27 = int_to_ptr.vmem [resolvable:$false] %s447_s27 }
  0x22   : > { %s449_s28 = scalar_lea.vmem %s448_s27, 4096  ;;  %p450_p11 = scmp.lt.s32.totalorder %s622_s6, %s448_s27 }
  0x23   : > { %p445_p2 = pnand %p443_p0, %p429_p1  ;;  %p451_p4 = scmp.lt.s32.totalorder %s449_s28, %s442_s22 }
  0x25   : > { %p446_p12 = pneg %p445_p2  ;;  %p452_p5 = por %p451_p4, %p450_p11 }
  0x27   : > { %p453_p7 = pnand %p452_p5, %p446_p12 }
  0x29   : > { %456 = shalt.err (!%p453_p7)
}
  0x2a   : > { %s526_s29 = smov 128   ;;  %s527_s30 = smov 8  }
  0x2b   : > { %382 = dma.hbm_to_vmem [thread:$0]  (!%p618_p13), %s614_s4, 2048, %s622_s6, %s624_s8, %s526_s29, %s526_s29, %s527_s30  }
  0x2c   : > { %p364_p9 = scmp.ge.s32.totalorder %s523_s15, 1  ;;  %p156_p1 = scmp.lt.s32.totalorder %s523_s15, 3 }
  0x2e   : > { %p157_p3 = pnand %p364_p9, %p156_p1 }
  0x2f   : > { %s655_s5 = sand.u32 (!%p157_p3), 1, %s515_s13  }
  0x30   : > { %160 = sbr.rel (%p157_p3) target bundleno = 99 (0x63), region = 32  ;;  %s365_s9 = sshll.u32 (!%p157_p3), %s655_s5, 7 }
  0x31   : > { %s163_s10 = scalar_lea.sflag (!%p157_p3), [#allocation3], %s655_s5  ;;  %s661_s11 = scalar_lea.vmem (!%p157_p3), [#allocation2], %s365_s9 }
  0x37   : > { %502 = dma.done.wait (%p594_p6), %s163_s10, 2048  }
  0x38   : > { %504 = vsyncadd (%p594_p6), %s163_s10, 4294965248  ;;  %v207_v0 = vld [vmem:[%s761_s1] sm:$0x1]  ;;  %v211_v2 = vlaneseq  ;;  %v192_v6 = vld [vmem:[%s661_s11 + $0x8] sm:$0xff]  ;;  %s374_s8 = sshll.u32 %s572_s16, 11  ;;  %s692_s17 = scalar_lea.vmem [#allocation5], %s365_s9 }
  0x39   : > { %v208_v1 = vmul.f32 1.442695, %v207_v0  ;;  %v191_v5 = vld [vmem:[%s661_s11] sm:$0xff]  ;;  %v193_v8 = vld [vmem:[%s661_s11 + $0x10] sm:$0xff]  ;;  %v194_v9 = vld [vmem:[%s661_s11 + $0x18] sm:$0xff]  ;;  %s285_s19 = sshll.u32 %s692_s17, 4  ;;  %s706_s22 = scalar_lea.hbm %s763_s3, %s374_s8  ;;  %s708_s19 = int_to_ptr.vmem [resolvable:$true] %s285_s19 }
  0x3a   : > { %v212_v3 = vshrl.u32 %v211_v2, 7  ;;  %v195_v10 = vld [vmem:[%s661_s11 + $0x20] sm:$0xff]  ;;  %v196_v12 = vld [vmem:[%s661_s11 + $0x28] sm:$0xff]  ;;  %v197_v13 = vld [vmem:[%s661_s11 + $0x30] sm:$0xff]  ;;  %s272_s26 = scalar_lea.sflag [#allocation4], %s655_s5  ;;  %s457_s27 = scalar_lea.vmem %s708_s19, 2048 }
  0x3b   : > { %425 = vpow2.f32 %v208_v1  ;;  %v198_v14 = vld [vmem:[%s661_s11 + $0x38] sm:$0xff]  ;;  %v367_v15 = vld [vmem:[%s762_s2] ss:$0 sm:$0xff]  ;;  %v200_v21 = vld [vmem:[%s661_s11 + $0x48] sm:$0xff]  ;;  %p458_p6 = scmp.ne.s32.totalorder %s708_s19, %s457_s27  ;;  %p770_p11 = scmp.ne.s32.totalorder %s767_s24, 0 }
  0x3c   : > { %v213_v4 = vsub.s32 0, %v212_v3  ;;  %v199_v20 = vld [vmem:[%s661_s11 + $0x40] sm:$0xff]  ;;  %v201_v26 = vld [vmem:[%s661_s11 + $0x50] sm:$0xff]  ;;  %v202_v27 = vld [vmem:[%s661_s11 + $0x58] sm:$0xff]  ;;  %s528_s28 = smov [#allocation5]  }
  0x3d   : > { %v203_v28 = vld [vmem:[%s661_s11 + $0x60] sm:$0xff]  ;;  %v204_v33 = vld [vmem:[%s661_s11 + $0x68] sm:$0xff]  ;;  %v205_v34 = vld [vmem:[%s661_s11 + $0x70] sm:$0xff]  ;;  %p459_p12 = pnand %p458_p6, %p770_p11  ;;  %s461_s29 = sshll.u32 %s528_s28, 4  ;;  %s462_s29 = int_to_ptr.vmem [resolvable:$false] %s461_s29 }
  0x3e   : > { %v206_v35 = vld [vmem:[%s661_s11 + $0x78] sm:$0xff]  ;;  %s463_s30 = scalar_lea.vmem %s462_s29, 4096  ;;  %p464_p8 = scmp.lt.s32.totalorder %s708_s19, %s462_s29 }
  0x3f   : > { %p460_p13 = pneg %p459_p12  ;;  %p465_p10 = scmp.lt.s32.totalorder %s463_s30, %s457_s27 }
  0x41   : > { %p466_p0 = por %p465_p10, %p464_p8 }
  0x43   : > { %p467_p2 = pnand %p466_p0, %p460_p13 }
  0x45   : > { %v426_v7 = vpop.eup %425 }
  0x46   : > { %v214_v11 = vrot.slane %v426_v7, %v213_v4 }
  0x48   : > { %v216_v16 = vmul.f32 %v214_v11, %v191_v5  ;;  %v217_v17 = vmul.f32 %v214_v11, %v192_v6  ;;  %v218_v18 = vmul.f32 %v214_v11, %v193_v8  ;;  %v219_v19 = vmul.f32 %v214_v11, %v194_v9 }
  0x49   : > { %v220_v22 = vmul.f32 %v214_v11, %v195_v10  ;;  %v221_v23 = vmul.f32 %v214_v11, %v196_v12  ;;  %v222_v24 = vmul.f32 %v214_v11, %v197_v13  ;;  %v223_v25 = vmul.f32 %v214_v11, %v198_v14 }
  0x4a   : > { %v239_v29 = vadd.f32 %v367_v15, %v216_v16  ;;  %v240_v30 = vadd.f32 %v367_v15, %v217_v17  ;;  %v241_v31 = vadd.f32 %v367_v15, %v218_v18  ;;  %v242_v32 = vadd.f32 %v367_v15, %v219_v19 }
  0x4b   : > { %v243_v36 = vadd.f32 %v367_v15, %v220_v22  ;;  %v244_v37 = vadd.f32 %v367_v15, %v221_v23  ;;  %v245_v38 = vadd.f32 %v367_v15, %v222_v24  ;;  %v246_v39 = vadd.f32 %v367_v15, %v223_v25 }
  0x4c   : > { %255 = vst [vmem:[%s692_s17] sm:$0xff] %v239_v29  ;;  %256 = vst [vmem:[%s692_s17 + $0x8] sm:$0xff] %v240_v30  ;;  %v224_v40 = vmul.f32 %v214_v11, %v199_v20  ;;  %v225_v41 = vmul.f32 %v214_v11, %v200_v21  ;;  %v226_v42 = vmul.f32 %v214_v11, %v201_v26 }
  0x4d   : > { %257 = vst [vmem:[%s692_s17 + $0x10] sm:$0xff] %v241_v31  ;;  %258 = vst [vmem:[%s692_s17 + $0x18] sm:$0xff] %v242_v32  ;;  %v227_v43 = vmul.f32 %v214_v11, %v202_v27  ;;  %v228_v44 = vmul.f32 %v214_v11, %v203_v28  ;;  %v229_v45 = vmul.f32 %v214_v11, %v204_v33 }
  0x4e   : > { %259 = vst [vmem:[%s692_s17 + $0x20] sm:$0xff] %v243_v36  ;;  %260 = vst [vmem:[%s692_s17 + $0x28] sm:$0xff] %v244_v37  ;;  %v230_v46 = vmul.f32 %v214_v11, %v205_v34  ;;  %v231_v47 = vmul.f32 %v214_v11, %v206_v35  ;;  %v247_v48 = vadd.f32 %v367_v15, %v224_v40 }
  0x4f   : > { %261 = vst [vmem:[%s692_s17 + $0x30] sm:$0xff] %v245_v38  ;;  %262 = vst [vmem:[%s692_s17 + $0x38] sm:$0xff] %v246_v39  ;;  %v248_v49 = vadd.f32 %v367_v15, %v225_v41  ;;  %v249_v50 = vadd.f32 %v367_v15, %v226_v42  ;;  %v250_v51 = vadd.f32 %v367_v15, %v227_v43 }
  0x50   : > { %v251_v52 = vadd.f32 %v367_v15, %v228_v44  ;;  %v252_v53 = vadd.f32 %v367_v15, %v229_v45  ;;  %v253_v54 = vadd.f32 %v367_v15, %v230_v46  ;;  %v254_v55 = vadd.f32 %v367_v15, %v231_v47  ;;  %263 = vst [vmem:[%s692_s17 + $0x40] sm:$0xff] %v247_v48 }
  0x51   : > { %264 = vst [vmem:[%s692_s17 + $0x48] sm:$0xff] %v248_v49  ;;  %265 = vst [vmem:[%s692_s17 + $0x50] sm:$0xff] %v249_v50 }
  0x52   : > { %266 = vst [vmem:[%s692_s17 + $0x58] sm:$0xff] %v250_v51  ;;  %267 = vst [vmem:[%s692_s17 + $0x60] sm:$0xff] %v251_v52 }
  0x53   : > { %268 = vst [vmem:[%s692_s17 + $0x68] sm:$0xff] %v252_v53  ;;  %269 = vst [vmem:[%s692_s17 + $0x70] sm:$0xff] %v253_v54 }
  0x54   : > { %270 = vst [vmem:[%s692_s17 + $0x78] sm:$0xff] %v254_v55 }
  0x55   : > { %470 = shalt.err (!%p467_p2)
}
  0x56   : > { %s471_s9 = scalar_lea.hbm %s706_s22, 2048  ;;  %s475_s4 = scalar_lea.hbm %s763_s3, 4096 }
  0x57   : > { %p472_p4 = scmp.ne.s32.totalorder %s706_s22, %s471_s9  ;;  %p476_p9 = scmp.lt.u32.totalorder %s706_s22, %s763_s3 }
  0x58   : > { %p477_p1 = scmp.lt.u32.totalorder %s475_s4, %s471_s9  ;;  %p479_p6 = scmp.lt.u32.totalorder %s471_s9, %s706_s22 }
  0x59   : > { %p473_p5 = pnand %p472_p4, %p770_p11 }
  0x5a   : > { %p478_p3 = por %p477_p1, %p476_p9 }
  0x5b   : > { %p474_p7 = pneg %p473_p5 }
  0x5c   : > { %p480_p12 = por %p479_p6, %p478_p3 }
  0x5e   : > { %p481_p13 = pnand %p480_p12, %p474_p7 }
  0x60   : > { %484 = shalt.err (!%p481_p13)
}
  0x61   : > { %s529_s7 = smov 128   ;;  %s530_s8 = smov 8  }
  0x62   : > { %377 = dma.vmem_to_hbm [thread:$0]  (%p770_p11), %s708_s19, 2048, %s706_s22, %s272_s26, %s529_s7, %s529_s7, %s530_s8  }
  0x63 PF: > { %s300_s17 = sand.u32 1, %s511_s12   ;;  %p771_p8 = scmp.ne.s32.totalorder %s768_s25, 0 }
  0x64   : > { %p772_p10 = scmp.ge.s32.totalorder %s523_s15, 2  ;;  %s301_s16 = scalar_lea.sflag [#allocation4], %s300_s17 }
  0x66   : > { %p384_p0 = pnand %p772_p10, %p771_p8 }
  0x68   : > { %506 = dma.done.wait (!%p384_p0), %s301_s16, 2048  }
  0x69   : > { %508 = vsyncadd (!%p384_p0), %s301_s16, 4294965248  ;;  %p16_p2 = scmp.ge.s32.totalorder %s576_s18, 4   ;;  %s773_s12 = smov %s515_s13 }
  0x6a   : > { %s774_s13 = smov %s519_s14  ;;  %s775_s14 = smov %s588_s21 }
  0x6b   : > { %s776_s15 = smov %s576_s18  ;;  %18 = sbr.rel (!%p16_p2) target bundleno = 5 (0x5), region = 77 }
  0x72   :  { %306 = vsyncpa [#allocation3], 1 }
  0x73   :  { %308 = vsyncpa [#allocation3 + $0x1], 1 }
  0x74   :  { %309 = vsyncpa [#allocation4], 1 }
  0x75   :  { %311 = vsyncpa [#allocation4 + $0x1], 1 }

</bundles_post_ra>
